<compile_context>
chip_gen: v7x
topology: tpu7x:2x2x1
jax: 0.10.0
libtpu: 0.0.40
codegen_flags: <defaults>
</compile_context>

<pallas_src>
import functools

import jax
import jax.numpy as jnp
from jax.experimental import pallas as pl
from jax.experimental.pallas import tpu as pltpu


def _round_up(n, m):
    return ((n + m - 1) // m) * m


# ----------------------------- Pallas kernel --------------------------------
def charcnn_fused_kernel(x_ref, w_ref, b_ref, o_ref, *, num_positions):
    """Fused Conv1d(stride=D) + global max-pool + bias + ReLU, all filter sizes.

    x_ref: (bt, L*D)            flattened char embeddings (row-major over (L, D))
    w_ref: (T_max, L*D, OUT_W)  per-position weight slabs, final column order
    b_ref: (1, OUT_W)           concatenated bias (zero in pad lanes)
    o_ref: (bt, OUT_W)          lane-dense pooled features (cols >= n_out are 0)
    """
    x = x_ref[...]
    # Running max over conv positions. Each (bt, LD) @ (LD, OUT_W) dot already
    # lands in the output lane layout, so pooling is pure aligned VPU maxima
    # (no lane rotates / masked selects) and only a (bt, OUT_W) accumulator
    # stays live instead of a (bt, T_max*OUT_W) intermediate.
    acc = jnp.dot(x, w_ref[0], preferred_element_type=jnp.float32)
    for t in range(1, num_positions):
        acc = jnp.maximum(
            acc, jnp.dot(x, w_ref[t], preferred_element_type=jnp.float32))
    # Bias + ReLU hoisted after the pool: max_t relu(y_t + b) == relu(max_t y_t + b).
    o_ref[...] = jnp.maximum(acc + b_ref[...], 0.0).astype(o_ref.dtype)


# --------------------------- static weight repack ---------------------------
def prepare_charcnn_params(weights, biases, *, filter_sizes, char_dim,
                           max_word_len, num_feature_maps,
                           compute_dtype=jnp.float32):
    """Repack Conv1d weights once (outside the hot path).

    weights[i]: (F, 1, fs_i*D) PyTorch Conv1d layout.  Returns:
      w_big: (T_max, L*D, OUT_W)  slab t = all filters' position-t windows,
             placed at their final output columns; invalid (filter, position)
             slots reuse a valid window so the running max is unchanged.
      b_pad: (1, OUT_W)           concatenated bias, zero-padded to 128 lanes.
      n_out: F * n_filters        number of real output columns.
    """
    L, D, F = max_word_len, char_dim, num_feature_maps
    LD = L * D
    n_filters = len(filter_sizes)
    n_out = F * n_filters
    out_w = max(128, _round_up(n_out, 128))
    T_max = max(L - fs + 1 for fs in filter_sizes)

    w_big = jnp.zeros((T_max, LD, out_w), jnp.float32)
    for f_idx, (fs, w) in enumerate(zip(filter_sizes, weights)):
        assert fs <= L, "filter_size must be <= max_word_len"
        T = L - fs + 1
        w2 = jnp.transpose(
            jnp.asarray(w, jnp.float32).reshape(F, fs * D))        # (fs*D, F)
        col = f_idx * F
        for t in range(T_max):
            # Positions t >= T are invalid for this filter: duplicate a valid
            # window (t % T) so the max over all T_max slabs equals the max
            # over valid positions (a zero column could spuriously win the max
            # when all true pre-activations are negative).
            t_src = t if t < T else (t % T)
            w_big = w_big.at[t, t_src * D:(t_src + fs) * D, col:col + F].set(w2)
    w_big = w_big.astype(compute_dtype)

    b_pad = jnp.zeros((1, out_w), jnp.float32)
    b_pad = b_pad.at[0, :n_out].set(
        jnp.concatenate([jnp.asarray(b, jnp.float32).reshape(-1)
                         for b in biases]))
    return w_big, b_pad, n_out


# ------------------------------ tile selection -------------------------------
def _choose_batch_tile(B, b_tile):
    """Batch tile: big enough to amortize per-step overhead (~1 MiB of x/step),
    but split into >= 4 grid steps when B allows so v7x's two TensorCores both
    get work and the DMA pipeline has something to overlap."""
    bt = min(b_tile, _round_up(B, 8))
    if B >= 4 * 512:
        bt = min(bt, max(512, _round_up(-(-B // 4), 8)))
    return max(bt, 8)


# -------------------------------- forward -----------------------------------
@functools.partial(jax.jit, static_argnames=("n_out", "b_tile"))
def charcnn_forward(x, w_big, b_pad, *, n_out, b_tile=2048):
    """x: (B, L, D) -> (B, n_out) float32.

    x is used in its own dtype (no wrapper-side cast): pass bf16 x + bf16-packed
    weights only if the producer already emits bf16 (then b_tile ~4096-8192 is
    reasonable since each row is half the bytes).
    """
    B, L, D = x.shape
    LD = L * D
    T_max, LD_w, out_w = w_big.shape
    assert LD_w == LD and b_pad.shape == (1, out_w) and n_out <= out_w

    x2d = x.reshape(B, LD)                      # == torch .view(B, 1, -1)

    bt = _choose_batch_tile(B, b_tile)
    grid = pl.cdiv(B, bt)                       # ragged last block masked by Pallas

    x_isz = jnp.dtype(x.dtype).itemsize
    w_isz = jnp.dtype(w_big.dtype).itemsize
    # VMEM budget: x + out double-buffered, weights/bias resident (budget 2x
    # defensively), plus the (bt, out_w) running-max live value. v7x-safe cap.
    vmem_est = (2 * bt * LD * x_isz + 2 * bt * out_w * 4
                + 2 * T_max * LD * out_w * w_isz + 2 * out_w * 4
                + bt * out_w * 4)
    vmem_limit = int(min(max(2 * vmem_est, 8 << 20), 48 << 20))

    cost = pl.CostEstimate(
        flops=int(2 * B * LD * out_w * T_max),
        transcendentals=0,
        bytes_accessed=int(B * LD * x_isz + B * out_w * 4
                           + T_max * LD * out_w * w_isz + out_w * 4))

    out = pl.pallas_call(
        functools.partial(charcnn_fused_kernel, num_positions=T_max),
        out_shape=jax.ShapeDtypeStruct((B, out_w), jnp.float32),
        grid=(grid,),
        in_specs=[
            pl.BlockSpec((bt, LD), lambda i: (i, 0)),             # x (pipelined)
            pl.BlockSpec((T_max, LD, out_w), lambda i: (0, 0, 0)),  # weights (resident)
            pl.BlockSpec((1, out_w), lambda i: (0, 0)),           # bias (resident)
        ],
        out_specs=pl.BlockSpec((bt, out_w), lambda i: (i, 0)),
        compiler_params=pltpu.CompilerParams(
            dimension_semantics=("parallel",),
            vmem_limit_bytes=vmem_limit),
        cost_estimate=cost,
    )(x2d, w_big, b_pad)
    return out[:, :n_out]


# ---------------------------- pure-JAX reference ----------------------------
def charcnn_reference(x, weights, biases, *, filter_sizes):
    B, L, D = x.shape
    xf = x.astype(jnp.float32).reshape(B, 1, L * D)
    outs = []
    for fs, w, b in zip(filter_sizes, weights, biases):
        y = jax.lax.conv_general_dilated(
            xf, w, window_strides=(D,), padding="VALID",
            dimension_numbers=("NCH", "OIH", "NCH"))
        y = jnp.maximum(y + b[None, :, None], 0.0)
        y = jnp.max(y, axis=-1)      # max_pool1d over the whole (L - fs + 1) length
        outs.append(y)
    return jnp.concatenate(outs, axis=1)


# --------------------------------- main --------------------------------------
if __name__ == "__main__":
    FILTER_SIZES = (2, 3, 4)
    num_feature_maps = 32     # args.num_feature_maps
    char_dim = 16             # args.char_dim
    max_word_len = 8
    batch_seq_len = 8

    key = jax.random.PRNGKey(0)
    kx, kx2, *kws = jax.random.split(key, 2 + 2 * len(FILTER_SIZES))

    x = jax.random.normal(kx, (batch_seq_len, max_word_len, char_dim),
                          dtype=jnp.float32)

    # Deterministic Conv1d-style init: U(-1/sqrt(fan_in), 1/sqrt(fan_in)).
    weights, biases = [], []
    for i, fs in enumerate(FILTER_SIZES):
        ksz = char_dim * fs
        bound = 1.0 / (ksz ** 0.5)
        weights.append(jax.random.uniform(
            kws[2 * i], (num_feature_maps, 1, ksz),
            minval=-bound, maxval=bound, dtype=jnp.float32))
        biases.append(jax.random.uniform(
            kws[2 * i + 1], (num_feature_maps,),
            minval=-bound, maxval=bound, dtype=jnp.float32))

    ref = jax.block_until_ready(
        charcnn_reference(x, weights, biases, filter_sizes=FILTER_SIZES))

    # ---- f32 path (tight check) ----
    w_big, b_pad, n_out = prepare_charcnn_params(
        weights, biases, filter_sizes=FILTER_SIZES, char_dim=char_dim,
        max_word_len=max_word_len, num_feature_maps=num_feature_maps,
        compute_dtype=jnp.float32)
    out = jax.block_until_ready(
        charcnn_forward(x, w_big, b_pad, n_out=n_out))
    assert out.shape == (batch_seq_len, num_feature_maps * len(FILTER_SIZES))
    assert jnp.allclose(out, ref, atol=1e-5, rtol=1e-5), "f32 mismatch vs ref"

    # ---- ragged-grid check (B not covered by one clean tile; no jnp.pad of x) ----
    B2 = 100
    x2 = jax.random.normal(kx2, (B2, max_word_len, char_dim), dtype=jnp.float32)
    ref2 = jax.block_until_ready(
        charcnn_reference(x2, weights, biases, filter_sizes=FILTER_SIZES))
    out2 = jax.block_until_ready(
        charcnn_forward(x2, w_big, b_pad, n_out=n_out))
    assert out2.shape == (B2, n_out)
    assert jnp.allclose(out2, ref2, atol=1e-5, rtol=1e-5), "ragged mismatch vs ref"

    # ---- bf16 compute path: x already bf16 from the producer (no in-wrapper cast) ----
    x_bf16 = x.astype(jnp.bfloat16)   # stands in for an upstream bf16 embedding table
    w_big16, b_pad16, _ = prepare_charcnn_params(
        weights, biases, filter_sizes=FILTER_SIZES, char_dim=char_dim,
        max_word_len=max_word_len, num_feature_maps=num_feature_maps,
        compute_dtype=jnp.bfloat16)
    out16 = jax.block_until_ready(
        charcnn_forward(x_bf16, w_big16, b_pad16, n_out=n_out))
    assert jnp.allclose(out16, ref, atol=5e-2, rtol=5e-2), "bf16 mismatch vs ref"

    print("KERNEL_OK")
</pallas_src>

<mosaic_0001>
module attributes {stable_mosaic.version = 11 : i64} {
  func.func @charcnn_fused_kernel(%arg0: i32, %arg1: memref<8x128xf32, #tpu.memory_space<vmem>>, %arg2: memref<7x128x128xf32, #tpu.memory_space<vmem>>, %arg3: memref<1x128xf32, #tpu.memory_space<vmem>>, %arg4: memref<8x128xf32, #tpu.memory_space<vmem>>) attributes {dimension_semantics = [#tpu.dimension_semantics<parallel>], iteration_bounds = array<i64: 1>, scalar_prefetch = 0 : i64, scratch_operands = 0 : i64, tpu.core_type = #tpu.core_type<tc>, window_params = [{transform_indices = @transform_0, window_bounds = array<i64: 8, 128>}, {pipeline_mode = #tpu.pipeline_mode<synchronous>, transform_indices = @transform_1, window_bounds = array<i64: 7, 128, 128>}, {pipeline_mode = #tpu.pipeline_mode<synchronous>, transform_indices = @transform_2, window_bounds = array<i64: 1, 128>}, {transform_indices = @transform_3, window_bounds = array<i64: 8, 128>}]} {
    %c0 = arith.constant 0 : index
    %c0_0 = arith.constant 0 : index
    %0 = vector.load %arg1[%c0, %c0_0] : memref<8x128xf32, #tpu.memory_space<vmem>>, vector<8x128xf32>
    %c0_1 = arith.constant 0 : index
    %c0_2 = arith.constant 0 : index
    %c0_3 = arith.constant 0 : index
    %1 = vector.load %arg2[%c0_1, %c0_2, %c0_3] : memref<7x128x128xf32, #tpu.memory_space<vmem>>, vector<1x128x128xf32>
    %2 = vector.shape_cast %1 : vector<1x128x128xf32> to vector<128x128xf32>
    %cst = arith.constant dense<0.000000e+00> : vector<8x128xf32>
    %3 = tpu.matmul %0, %2, %cst {dimension_numbers = #tpu.dot_dimension_numbers<[1], [0], [0], [1], [0, 0, 1, 1], [], []>} : vector<8x128xf32>, vector<128x128xf32>, vector<8x128xf32> -> vector<8x128xf32>
    %c1 = arith.constant 1 : index
    %c0_4 = arith.constant 0 : index
    %c0_5 = arith.constant 0 : index
    %4 = vector.load %arg2[%c1, %c0_4, %c0_5] : memref<7x128x128xf32, #tpu.memory_space<vmem>>, vector<1x128x128xf32>
    %5 = vector.shape_cast %4 : vector<1x128x128xf32> to vector<128x128xf32>
    %cst_6 = arith.constant dense<0.000000e+00> : vector<8x128xf32>
    %6 = tpu.matmul %0, %5, %cst_6 {dimension_numbers = #tpu.dot_dimension_numbers<[1], [0], [0], [1], [0, 0, 1, 1], [], []>} : vector<8x128xf32>, vector<128x128xf32>, vector<8x128xf32> -> vector<8x128xf32>
    %7 = arith.maximumf %3, %6 : vector<8x128xf32>
    %c2 = arith.constant 2 : index
    %c0_7 = arith.constant 0 : index
    %c0_8 = arith.constant 0 : index
    %8 = vector.load %arg2[%c2, %c0_7, %c0_8] : memref<7x128x128xf32, #tpu.memory_space<vmem>>, vector<1x128x128xf32>
    %9 = vector.shape_cast %8 : vector<1x128x128xf32> to vector<128x128xf32>
    %cst_9 = arith.constant dense<0.000000e+00> : vector<8x128xf32>
    %10 = tpu.matmul %0, %9, %cst_9 {dimension_numbers = #tpu.dot_dimension_numbers<[1], [0], [0], [1], [0, 0, 1, 1], [], []>} : vector<8x128xf32>, vector<128x128xf32>, vector<8x128xf32> -> vector<8x128xf32>
    %11 = arith.maximumf %7, %10 : vector<8x128xf32>
    %c3 = arith.constant 3 : index
    %c0_10 = arith.constant 0 : index
    %c0_11 = arith.constant 0 : index
    %12 = vector.load %arg2[%c3, %c0_10, %c0_11] : memref<7x128x128xf32, #tpu.memory_space<vmem>>, vector<1x128x128xf32>
    %13 = vector.shape_cast %12 : vector<1x128x128xf32> to vector<128x128xf32>
    %cst_12 = arith.constant dense<0.000000e+00> : vector<8x128xf32>
    %14 = tpu.matmul %0, %13, %cst_12 {dimension_numbers = #tpu.dot_dimension_numbers<[1], [0], [0], [1], [0, 0, 1, 1], [], []>} : vector<8x128xf32>, vector<128x128xf32>, vector<8x128xf32> -> vector<8x128xf32>
    %15 = arith.maximumf %11, %14 : vector<8x128xf32>
    %c4 = arith.constant 4 : index
    %c0_13 = arith.constant 0 : index
    %c0_14 = arith.constant 0 : index
    %16 = vector.load %arg2[%c4, %c0_13, %c0_14] : memref<7x128x128xf32, #tpu.memory_space<vmem>>, vector<1x128x128xf32>
    %17 = vector.shape_cast %16 : vector<1x128x128xf32> to vector<128x128xf32>
    %cst_15 = arith.constant dense<0.000000e+00> : vector<8x128xf32>
    %18 = tpu.matmul %0, %17, %cst_15 {dimension_numbers = #tpu.dot_dimension_numbers<[1], [0], [0], [1], [0, 0, 1, 1], [], []>} : vector<8x128xf32>, vector<128x128xf32>, vector<8x128xf32> -> vector<8x128xf32>
    %19 = arith.maximumf %15, %18 : vector<8x128xf32>
    %c5 = arith.constant 5 : index
    %c0_16 = arith.constant 0 : index
    %c0_17 = arith.constant 0 : index
    %20 = vector.load %arg2[%c5, %c0_16, %c0_17] : memref<7x128x128xf32, #tpu.memory_space<vmem>>, vector<1x128x128xf32>
    %21 = vector.shape_cast %20 : vector<1x128x128xf32> to vector<128x128xf32>
    %cst_18 = arith.constant dense<0.000000e+00> : vector<8x128xf32>
    %22 = tpu.matmul %0, %21, %cst_18 {dimension_numbers = #tpu.dot_dimension_numbers<[1], [0], [0], [1], [0, 0, 1, 1], [], []>} : vector<8x128xf32>, vector<128x128xf32>, vector<8x128xf32> -> vector<8x128xf32>
    %23 = arith.maximumf %19, %22 : vector<8x128xf32>
    %c6 = arith.constant 6 : index
    %c0_19 = arith.constant 0 : index
    %c0_20 = arith.constant 0 : index
    %24 = vector.load %arg2[%c6, %c0_19, %c0_20] : memref<7x128x128xf32, #tpu.memory_space<vmem>>, vector<1x128x128xf32>
    %25 = vector.shape_cast %24 : vector<1x128x128xf32> to vector<128x128xf32>
    %cst_21 = arith.constant dense<0.000000e+00> : vector<8x128xf32>
    %26 = tpu.matmul %0, %25, %cst_21 {dimension_numbers = #tpu.dot_dimension_numbers<[1], [0], [0], [1], [0, 0, 1, 1], [], []>} : vector<8x128xf32>, vector<128x128xf32>, vector<8x128xf32> -> vector<8x128xf32>
    %27 = arith.maximumf %23, %26 : vector<8x128xf32>
    %c0_22 = arith.constant 0 : index
    %c0_23 = arith.constant 0 : index
    %28 = vector.load %arg3[%c0_22, %c0_23] : memref<1x128xf32, #tpu.memory_space<vmem>>, vector<1x128xf32>
    %29 = vector.broadcast %28 : vector<1x128xf32> to vector<8x128xf32>
    %30 = arith.addf %27, %29 : vector<8x128xf32>
    %cst_24 = arith.constant 0.000000e+00 : f32
    %31 = vector.broadcast %cst_24 : f32 to vector<8x128xf32>
    %32 = arith.maximumf %30, %31 : vector<8x128xf32>
    %c0_25 = arith.constant 0 : index
    %c0_26 = arith.constant 0 : index
    %33 = vector.load %arg4[%c0_25, %c0_26] : memref<8x128xf32, #tpu.memory_space<vmem>>, vector<8x128xf32>
    tpu.vector_store %arg4[%c0_25, %c0_26], %32 {strides = array<i32>} : memref<8x128xf32, #tpu.memory_space<vmem>>, vector<8x128xf32>,
    return
  }
  func.func @transform_0(%arg0: i32) -> (i32, i32) {
    %c0_i32 = arith.constant 0 : i32
    %c0_i32_0 = arith.constant 0 : i32
    return %arg0, %c0_i32 : i32, i32
  }
  func.func @transform_1(%arg0: i32) -> (i32, i32, i32) {
    %c0_i32 = arith.constant 0 : i32
    %c0_i32_0 = arith.constant 0 : i32
    %c0_i32_1 = arith.constant 0 : i32
    %c0_i32_2 = arith.constant 0 : i32
    return %c0_i32, %c0_i32_0, %c0_i32_1 : i32, i32, i32
  }
  func.func @transform_2(%arg0: i32) -> (i32, i32) {
    %c0_i32 = arith.constant 0 : i32
    %c0_i32_0 = arith.constant 0 : i32
    %c0_i32_1 = arith.constant 0 : i32
    return %c0_i32, %c0_i32_0 : i32, i32
  }
  func.func @transform_3(%arg0: i32) -> (i32, i32) {
    %c0_i32 = arith.constant 0 : i32
    %c0_i32_0 = arith.constant 0 : i32
    return %arg0, %c0_i32 : i32, i32
  }
}

</mosaic_0001>

<bundles_post_ra>
// kernel: charcnn_forward.1
= control target key start
LH: loop header
LB: loop body
LE: loop exit
PB: predicated region body
PF: predicated region fallthrough
CT: control target
= control target key end

     0   :  { %8 = vsyncpa [#allocation3], 0  ;;  %s1393_s0 = inlined_call_operand.vmem [shape: f32[8,128], index: 0, kind: input, shape index: {}]   ;;  %s1394_s1 = inlined_call_operand.hbm [shape: f32[7,128,128], index: 1, kind: input, shape index: {}]   ;;  %s1395_s2 = inlined_call_operand.vmem [shape: f32[1,128], index: 2, kind: input, shape index: {}]   ;;  %s1396_s3 = inlined_call_operand.hbm [shape: f32[8,128], index: 3, kind: output, shape index: {}]  }
   0x1   :  { %9 = vsyncpa [#allocation4], 0  ;;  %s1257_s12 = smov [#allocation2]   ;;  %s1209_s16 = scalar_lea.hbm %s1394_s1, 14336 }
   0x2   :  { %s17_s13 = sshll.u32 %s1257_s12, 4  ;;  %p1210_p0 = scmp.ne.s32.totalorder %s1394_s1, %s1209_s16  ;;  %s18_s13 = int_to_ptr.vmem [resolvable:$true] %s17_s13 }
   0x3   :  { %p1213_p1 = scmp.lt.u32.totalorder %s1209_s16, %s1394_s1 }
   0x5   :  { %p1215_p2 = pnand %p1213_p1, %p1210_p0 }
   0x7   :  { %1218 = shalt.err (!%p1215_p2)
}
   0x8   :  { %s1219_s21 = scalar_lea.vmem %s18_s13, 14336  ;;  %p1224_p4 = scmp.lt.s32.totalorder %s18_s13, %s18_s13 }
   0x9   :  { %p1220_p3 = scmp.ne.s32.totalorder %s18_s13, %s1219_s21  ;;  %p1225_p5 = scmp.lt.s32.totalorder %s1219_s21, %s1219_s21 }
   0xb   :  { %p1226_p6 = por %p1225_p5, %p1224_p4 }
   0xd   :  { %p1227_p7 = pnand %p1226_p6, %p1220_p3 }
   0xf   :  { %1230 = shalt.err (!%p1227_p7)
}
  0x10   :  { %s1258_s22 = smov 128   ;;  %s1259_s23 = smov 8  }
  0x11   :  { %23 = dma.hbm_to_vmem [thread:$0]  %s1394_s1, 14336, %s18_s13, [#allocation3], %s1258_s22, %s1258_s22, %s1259_s23  }
  0x12   :  { %1253 = dma.done.wait [#allocation3], 14336  }
  0x13   :  { %1254 = vsyncadd [#allocation3], 4294952960  ;;  %v1260_v0 = vmov 0.0|0.0   ;;  %vm1261_vm0 = vmmov 0   ;;  %v1262_v1 = vmov 0.0   ;;  %v30_v2 = vld [vmem:[#allocation2] sm:$0xff] }
  0x14   :  { %1034 = vmatprep.subr.bf16.mxu0 %v1260_v0  ;;  %1058 = vmatprep.subr.bf16.mxu1 %v1260_v0  ;;  %v31_v3 = vld [vmem:[#allocation2 + $0x8] sm:$0xff]  ;;  %v117_v4 = vld [vmem:[#allocation2 + $0x80] sm:$0xff]  ;;  %v32_v7 = vld [vmem:[#allocation2 + $0x10] sm:$0xff]  ;;  %s1263_s28 = smov [#allocation5]  }
  0x15   :  { %821 = vmatprep.mubr.msk.f32.mxu0 %vm1261_vm0, %v1262_v1  ;;  %856 = vmatprep.mubr.msk.f32.mxu1 %vm1261_vm0, %v1262_v1  ;;  %v1035_v5 = vpack.c.bf16 %v31_v3, %v30_v2  ;;  %v118_v6 = vld [vmem:[#allocation2 + $0x88] sm:$0xff]  ;;  %v33_v8 = vld [vmem:[#allocation2 + $0x18] sm:$0xff]  ;;  %v119_v10 = vld [vmem:[#allocation2 + $0x90] sm:$0xff]  ;;  %s660_s29 = sshll.u32 %s1263_s28, 4  ;;  %s661_s29 = int_to_ptr.vmem [resolvable:$true] %s660_s29 }
  0x16   :  { %v1059_v9 = vpack.c.bf16 %v118_v6, %v117_v4  ;;  %v120_v11 = vld [vmem:[#allocation2 + $0x98] sm:$0xff]  ;;  %v1038_v12 = vpack.c.bf16 %v33_v8, %v32_v7  ;;  %v34_v14 = vld [vmem:[#allocation2 + $0x20] sm:$0xff]  ;;  %v35_v15 = vld [vmem:[#allocation2 + $0x28] sm:$0xff]  ;;  %s1231_s30 = scalar_lea.vmem %s661_s29, 128  ;;  %p1236_p9 = scmp.lt.s32.totalorder %s661_s29, %s661_s29 }
  0x17   :  { %1036 = vmatpush3.bf16.msra.mxu0 %v1035_v5  ;;  %v1062_v13 = vpack.c.bf16 %v120_v11, %v119_v10  ;;  %v121_v16 = vld [vmem:[#allocation2 + $0xa0] sm:$0xff]  ;;  %v122_v17 = vld [vmem:[#allocation2 + $0xa8] sm:$0xff]  ;;  %v1041_v18 = vpack.c.bf16 %v35_v15, %v34_v14  ;;  %v36_v20 = vld [vmem:[#allocation2 + $0x30] sm:$0xff]  ;;  %p1232_p8 = scmp.ne.s32.totalorder %s661_s29, %s1231_s30  ;;  %p1237_p10 = scmp.lt.s32.totalorder %s1231_s30, %s1231_s30 }
  0x18   :  { %1060 = vmatpush3.bf16.msra.mxu1 %v1059_v9  ;;  %1037 = vmatprep.subr.bf16.mxu0 %v1260_v0  ;;  %v1065_v19 = vpack.c.bf16 %v122_v17, %v121_v16  ;;  %v37_v21 = vld [vmem:[#allocation2 + $0x38] sm:$0xff]  ;;  %v123_v22 = vld [vmem:[#allocation2 + $0xb0] sm:$0xff]  ;;  %v38_v26 = vld [vmem:[#allocation2 + $0x40] sm:$0xff] }
  0x19   :  { %1061 = vmatprep.subr.bf16.mxu1 %v1260_v0  ;;  %v124_v23 = vld [vmem:[#allocation2 + $0xb8] sm:$0xff]  ;;  %v1044_v24 = vpack.c.bf16 %v37_v21, %v36_v20  ;;  %v39_v27 = vld [vmem:[#allocation2 + $0x48] sm:$0xff]  ;;  %v125_v28 = vld [vmem:[#allocation2 + $0xc0] sm:$0xff]  ;;  %p1238_p11 = por %p1237_p10, %p1236_p9 }
  0x1a   :  { %v1068_v25 = vpack.c.bf16 %v124_v23, %v123_v22  ;;  %v126_v29 = vld [vmem:[#allocation2 + $0xc8] sm:$0xff]  ;;  %v1047_v30 = vpack.c.bf16 %v39_v27, %v38_v26  ;;  %v40_v32 = vld [vmem:[#allocation2 + $0x50] sm:$0xff]  ;;  %v41_v33 = vld [vmem:[#allocation2 + $0x58] sm:$0xff] }
  0x1b   :  { %1039 = vmatpush3.bf16.msra.mxu0 %v1038_v12  ;;  %v1071_v31 = vpack.c.bf16 %v126_v29, %v125_v28  ;;  %v127_v34 = vld [vmem:[#allocation2 + $0xd0] sm:$0xff]  ;;  %v128_v35 = vld [vmem:[#allocation2 + $0xd8] sm:$0xff]  ;;  %v1050_v36 = vpack.c.bf16 %v41_v33, %v40_v32  ;;  %v42_v38 = vld [vmem:[#allocation2 + $0x60] sm:$0xff]  ;;  %p1239_p12 = pnand %p1238_p11, %p1232_p8 }
  0x1c   :  { %1063 = vmatpush3.bf16.msra.mxu1 %v1062_v13  ;;  %1040 = vmatprep.subr.bf16.mxu0 %v1260_v0  ;;  %v1074_v37 = vpack.c.bf16 %v128_v35, %v127_v34  ;;  %v43_v39 = vld [vmem:[#allocation2 + $0x68] sm:$0xff]  ;;  %v129_v40 = vld [vmem:[#allocation2 + $0xe0] sm:$0xff]  ;;  %v44_v44 = vld [vmem:[#allocation2 + $0x70] sm:$0xff] }
  0x1d   :  { %1064 = vmatprep.subr.bf16.mxu1 %v1260_v0  ;;  %v130_v41 = vld [vmem:[#allocation2 + $0xe8] sm:$0xff]  ;;  %v1053_v42 = vpack.c.bf16 %v43_v39, %v42_v38  ;;  %v45_v45 = vld [vmem:[#allocation2 + $0x78] sm:$0xff]  ;;  %v131_v46 = vld [vmem:[#allocation2 + $0xf0] sm:$0xff] }
  0x1e   :  { %v1077_v43 = vpack.c.bf16 %v130_v41, %v129_v40  ;;  %v132_v47 = vld [vmem:[#allocation2 + $0xf8] sm:$0xff]  ;;  %v1056_v48 = vpack.c.bf16 %v45_v45, %v44_v44  ;;  %v205_v50 = vld [vmem:[#allocation2 + $0x100] sm:$0xff]  ;;  %v206_v51 = vld [vmem:[#allocation2 + $0x108] sm:$0xff] }
  0x1f   :  { %1042 = vmatpush3.bf16.msra.mxu0 %v1041_v18  ;;  %v1080_v49 = vpack.c.bf16 %v132_v47, %v131_v46  ;;  %v293_v52 = vld [vmem:[#allocation2 + $0x180] sm:$0xff]  ;;  %v294_v53 = vld [vmem:[#allocation2 + $0x188] sm:$0xff]  ;;  %v1083_v55 = vpack.c.bf16 %v206_v51, %v205_v50  ;;  %v207_v57 = vld [vmem:[#allocation2 + $0x110] sm:$0xff] }
  0x20   :  { %1066 = vmatpush3.bf16.msra.mxu1 %v1065_v19  ;;  %1043 = vmatprep.subr.bf16.mxu0 %v1260_v0  ;;  %v1319_v54 = vld [vmem:[%s1393_s0] sm:$0xff]  ;;  %v1107_v56 = vpack.c.bf16 %v294_v53, %v293_v52  ;;  %v208_v58 = vld [vmem:[#allocation2 + $0x118] sm:$0xff]  ;;  %v295_v59 = vld [vmem:[#allocation2 + $0x190] sm:$0xff] }
  0x21   :  { %1067 = vmatprep.subr.bf16.mxu1 %v1260_v0  ;;  %v296_v60 = vld [vmem:[#allocation2 + $0x198] sm:$0xff]  ;;  %v1086_v61 = vpack.c.bf16 %v208_v58, %v207_v57  ;;  %v209_v63 = vld [vmem:[#allocation2 + $0x120] sm:$0xff]  ;;  %v210_v2 = vld [vmem:[#allocation2 + $0x128] sm:$0xff] }
  0x22   :  { %v1110_v62 = vpack.c.bf16 %v296_v60, %v295_v59  ;;  %v297_v3 = vld [vmem:[#allocation2 + $0x1a0] sm:$0xff]  ;;  %v298_v4 = vld [vmem:[#allocation2 + $0x1a8] sm:$0xff]  ;;  %v1089_v5 = vpack.c.bf16 %v210_v2, %v209_v63  ;;  %v211_v7 = vld [vmem:[#allocation2 + $0x130] sm:$0xff] }
  0x23   :  { %1045 = vmatpush3.bf16.msra.mxu0 %v1044_v24  ;;  %v1113_v6 = vpack.c.bf16 %v298_v4, %v297_v3  ;;  %v212_v8 = vld [vmem:[#allocation2 + $0x138] sm:$0xff]  ;;  %v299_v9 = vld [vmem:[#allocation2 + $0x1b0] sm:$0xff]  ;;  %v213_v13 = vld [vmem:[#allocation2 + $0x140] sm:$0xff] }
  0x24   :  { %1069 = vmatpush3.bf16.msra.mxu1 %v1068_v25  ;;  %1046 = vmatprep.subr.bf16.mxu0 %v1260_v0  ;;  %v300_v10 = vld [vmem:[#allocation2 + $0x1b8] sm:$0xff]  ;;  %v1092_v11 = vpack.c.bf16 %v212_v8, %v211_v7  ;;  %v214_v14 = vld [vmem:[#allocation2 + $0x148] sm:$0xff]  ;;  %v301_v15 = vld [vmem:[#allocation2 + $0x1c0] sm:$0xff] }
  0x25   :  { %1070 = vmatprep.subr.bf16.mxu1 %v1260_v0  ;;  %v1116_v12 = vpack.c.bf16 %v300_v10, %v299_v9  ;;  %v302_v16 = vld [vmem:[#allocation2 + $0x1c8] sm:$0xff]  ;;  %v1095_v17 = vpack.c.bf16 %v214_v14, %v213_v13  ;;  %v215_v19 = vld [vmem:[#allocation2 + $0x150] sm:$0xff]  ;;  %v216_v20 = vld [vmem:[#allocation2 + $0x158] sm:$0xff] }
  0x26   :  { %v1119_v18 = vpack.c.bf16 %v302_v16, %v301_v15  ;;  %v303_v21 = vld [vmem:[#allocation2 + $0x1d0] sm:$0xff]  ;;  %v304_v22 = vld [vmem:[#allocation2 + $0x1d8] sm:$0xff]  ;;  %v1098_v23 = vpack.c.bf16 %v216_v20, %v215_v19  ;;  %v217_v25 = vld [vmem:[#allocation2 + $0x160] sm:$0xff] }
  0x27   :  { %1048 = vmatpush3.bf16.msra.mxu0 %v1047_v30  ;;  %v1122_v24 = vpack.c.bf16 %v304_v22, %v303_v21  ;;  %v218_v26 = vld [vmem:[#allocation2 + $0x168] sm:$0xff]  ;;  %v305_v27 = vld [vmem:[#allocation2 + $0x1e0] sm:$0xff]  ;;  %v220_v32 = vld [vmem:[#allocation2 + $0x178] sm:$0xff] }
  0x28   :  { %1072 = vmatpush3.bf16.msra.mxu1 %v1071_v31  ;;  %1049 = vmatprep.subr.bf16.mxu0 %v1260_v0  ;;  %v306_v28 = vld [vmem:[#allocation2 + $0x1e8] sm:$0xff]  ;;  %v1101_v29 = vpack.c.bf16 %v218_v26, %v217_v25  ;;  %v219_v31 = vld [vmem:[#allocation2 + $0x170] sm:$0xff]  ;;  %v308_v34 = vld [vmem:[#allocation2 + $0x1f8] sm:$0xff] }
  0x29   :  { %1073 = vmatprep.subr.bf16.mxu1 %v1260_v0  ;;  %v1125_v30 = vpack.c.bf16 %v306_v28, %v305_v27  ;;  %v307_v33 = vld [vmem:[#allocation2 + $0x1f0] sm:$0xff]  ;;  %v1104_v35 = vpack.c.bf16 %v220_v32, %v219_v31  ;;  %v382_v38 = vld [vmem:[#allocation2 + $0x208] sm:$0xff]  ;;  %v469_v39 = vld [vmem:[#allocation2 + $0x280] sm:$0xff] }
  0x2a   :  { %v470_v40 = vld [vmem:[#allocation2 + $0x288] sm:$0xff]  ;;  %v384_v44 = vld [vmem:[#allocation2 + $0x218] sm:$0xff]  ;;  %v471_v45 = vld [vmem:[#allocation2 + $0x290] sm:$0xff] }
  0x2b   :  { %1051 = vmatpush3.bf16.msra.mxu0 %v1050_v36  ;;  %v1128_v36 = vpack.c.bf16 %v308_v34, %v307_v33  ;;  %v472_v46 = vld [vmem:[#allocation2 + $0x298] sm:$0xff]  ;;  %v386_v50 = vld [vmem:[#allocation2 + $0x228] sm:$0xff]  ;;  %v473_v51 = vld [vmem:[#allocation2 + $0x2a0] sm:$0xff] }
  0x2c   :  { %1075 = vmatpush3.bf16.msra.mxu1 %v1074_v37  ;;  %1052 = vmatprep.subr.bf16.mxu0 %v1260_v0  ;;  %v381_v37 = vld [vmem:[#allocation2 + $0x200] sm:$0xff]  ;;  %v474_v52 = vld [vmem:[#allocation2 + $0x2a8] sm:$0xff]  ;;  %v388_v57 = vld [vmem:[#allocation2 + $0x238] sm:$0xff] }
  0x2d   :  { %1076 = vmatprep.subr.bf16.mxu1 %v1260_v0  ;;  %v1131_v41 = vpack.c.bf16 %v382_v38, %v381_v37  ;;  %v475_v58 = vld [vmem:[#allocation2 + $0x2b0] sm:$0xff]  ;;  %v476_v59 = vld [vmem:[#allocation2 + $0x2b8] sm:$0xff]  ;;  %v390_v63 = vld [vmem:[#allocation2 + $0x248] sm:$0xff] }
  0x2e   :  { %v477_v2 = vld [vmem:[#allocation2 + $0x2c0] sm:$0xff]  ;;  %v478_v3 = vld [vmem:[#allocation2 + $0x2c8] sm:$0xff]  ;;  %v392_v7 = vld [vmem:[#allocation2 + $0x258] sm:$0xff] }
  0x2f   :  { %1054 = vmatpush3.bf16.msra.mxu0 %v1053_v42  ;;  %v1155_v42 = vpack.c.bf16 %v470_v40, %v469_v39  ;;  %v479_v8 = vld [vmem:[#allocation2 + $0x2d0] sm:$0xff]  ;;  %v480_v9 = vld [vmem:[#allocation2 + $0x2d8] sm:$0xff]  ;;  %v394_v13 = vld [vmem:[#allocation2 + $0x268] sm:$0xff] }
  0x30   :  { %1078 = vmatpush3.bf16.msra.mxu1 %v1077_v43  ;;  %1055 = vmatprep.subr.bf16.mxu0 %v1260_v0  ;;  %v383_v43 = vld [vmem:[#allocation2 + $0x210] sm:$0xff]  ;;  %v481_v14 = vld [vmem:[#allocation2 + $0x2e0] sm:$0xff]  ;;  %v482_v15 = vld [vmem:[#allocation2 + $0x2e8] sm:$0xff] }
  0x31   :  { %1079 = vmatprep.subr.bf16.mxu1 %v1260_v0  ;;  %v1134_v47 = vpack.c.bf16 %v384_v44, %v383_v43  ;;  %v396_v19 = vld [vmem:[#allocation2 + $0x278] sm:$0xff]  ;;  %v483_v20 = vld [vmem:[#allocation2 + $0x2f0] sm:$0xff]  ;;  %v558_v25 = vld [vmem:[#allocation2 + $0x308] sm:$0xff] }
  0x32   :  { %v484_v21 = vld [vmem:[#allocation2 + $0x2f8] sm:$0xff]  ;;  %v559_v27 = vld [vmem:[#allocation2 + $0x310] sm:$0xff]  ;;  %v562_v31 = vld [vmem:[#allocation2 + $0x328] sm:$0xff] }
  0x33   :  { %1057 = vmatpush3.bf16.msra.mxu0 %v1056_v48  ;;  %v1158_v48 = vpack.c.bf16 %v472_v46, %v471_v45  ;;  %v560_v28 = vld [vmem:[#allocation2 + $0x318] sm:$0xff]  ;;  %v563_v33 = vld [vmem:[#allocation2 + $0x330] sm:$0xff]  ;;  %v566_v37 = vld [vmem:[#allocation2 + $0x348] sm:$0xff] }
  0x34   :  { %1081 = vmatpush3.bf16.msra.mxu1 %v1080_v49  ;;  %1082 = vmatprep.subr.bf16.mxu0 %v1260_v0  ;;  %v385_v49 = vld [vmem:[#allocation2 + $0x220] sm:$0xff]  ;;  %v564_v34 = vld [vmem:[#allocation2 + $0x338] sm:$0xff]  ;;  %v567_v39 = vld [vmem:[#allocation2 + $0x350] sm:$0xff] }
  0x35   :  { %1106 = vmatprep.subr.bf16.mxu1 %v1260_v0  ;;  %v1137_v53 = vpack.c.bf16 %v386_v50, %v385_v49  ;;  %v568_v40 = vld [vmem:[#allocation2 + $0x358] sm:$0xff]  ;;  %v571_v44 = vld [vmem:[#allocation2 + $0x370] sm:$0xff] }
  0x36   :  { %822 = vmatmul.mubr.f32.vlgmr.msra.gmra.mrb[0].mxu0 %v1319_v54  ;;  %v572_v45 = vld [vmem:[#allocation2 + $0x378] sm:$0xff] }
  0x37   :  { %857 = vmatmul.mubr.f32.vlgmr.msra.gmra.mrb[0].mxu1 %v1319_v54  ;;  %1084 = vmatpush3.bf16.msra.mxu0 %v1083_v55  ;;  %v1161_v55 = vpack.c.bf16 %v474_v52, %v473_v51  ;;  %v1200_v46 = vpack.c.bf16 %v572_v45, %v571_v44 }
  0x38   :  { %1108 = vmatpush3.bf16.msra.mxu1 %v1107_v56  ;;  %1085 = vmatprep.subr.bf16.mxu0 %v1260_v0  ;;  %v387_v56 = vld [vmem:[#allocation2 + $0x230] sm:$0xff] }
  0x39   :  { %1109 = vmatprep.subr.bf16.mxu1 %v1260_v0  ;;  %891 = vmatprep.mubr.msk.f32.mxu0 %vm1261_vm0, %v1262_v1  ;;  %v1140_v60 = vpack.c.bf16 %v388_v57, %v387_v56 }
  0x3a   :  { %926 = vmatprep.mubr.msk.f32.mxu1 %vm1261_vm0, %v1262_v1 }
  0x3b   :  { %1087 = vmatpush3.bf16.msra.mxu0 %v1086_v61  ;;  %v1164_v61 = vpack.c.bf16 %v476_v59, %v475_v58 }
  0x3c   :  { %1111 = vmatpush3.bf16.msra.mxu1 %v1110_v62  ;;  %1088 = vmatprep.subr.bf16.mxu0 %v1260_v0  ;;  %v389_v62 = vld [vmem:[#allocation2 + $0x240] sm:$0xff] }
  0x3d   :  { %1112 = vmatprep.subr.bf16.mxu1 %v1260_v0  ;;  %v1143_v4 = vpack.c.bf16 %v390_v63, %v389_v62 }
  0x3f   :  { %1090 = vmatpush3.bf16.msra.mxu0 %v1089_v5  ;;  %v1167_v5 = vpack.c.bf16 %v478_v3, %v477_v2 }
  0x40   :  { %1114 = vmatpush3.bf16.msra.mxu1 %v1113_v6  ;;  %1091 = vmatprep.subr.bf16.mxu0 %v1260_v0  ;;  %v391_v6 = vld [vmem:[#allocation2 + $0x250] sm:$0xff] }
  0x41   :  { %1115 = vmatprep.subr.bf16.mxu1 %v1260_v0  ;;  %v1146_v10 = vpack.c.bf16 %v392_v7, %v391_v6 }
  0x43   :  { %1093 = vmatpush3.bf16.msra.mxu0 %v1092_v11  ;;  %v1170_v11 = vpack.c.bf16 %v480_v9, %v479_v8 }
  0x44   :  { %1117 = vmatpush3.bf16.msra.mxu1 %v1116_v12  ;;  %1094 = vmatprep.subr.bf16.mxu0 %v1260_v0  ;;  %v393_v12 = vld [vmem:[#allocation2 + $0x260] sm:$0xff] }
  0x45   :  { %1118 = vmatprep.subr.bf16.mxu1 %v1260_v0  ;;  %v1149_v16 = vpack.c.bf16 %v394_v13, %v393_v12 }
  0x47   :  { %1096 = vmatpush3.bf16.msra.mxu0 %v1095_v17  ;;  %v1173_v17 = vpack.c.bf16 %v482_v15, %v481_v14 }
  0x48   :  { %1120 = vmatpush3.bf16.msra.mxu1 %v1119_v18  ;;  %1097 = vmatprep.subr.bf16.mxu0 %v1260_v0  ;;  %v395_v18 = vld [vmem:[#allocation2 + $0x270] sm:$0xff] }
  0x49   :  { %1121 = vmatprep.subr.bf16.mxu1 %v1260_v0  ;;  %v1152_v22 = vpack.c.bf16 %v396_v19, %v395_v18 }
  0x4b   :  { %1099 = vmatpush3.bf16.msra.mxu0 %v1098_v23  ;;  %v1176_v23 = vpack.c.bf16 %v484_v21, %v483_v20 }
  0x4c   :  { %1123 = vmatpush3.bf16.msra.mxu1 %v1122_v24  ;;  %1100 = vmatprep.subr.bf16.mxu0 %v1260_v0  ;;  %v557_v24 = vld [vmem:[#allocation2 + $0x300] sm:$0xff] }
  0x4d   :  { %1124 = vmatprep.subr.bf16.mxu1 %v1260_v0  ;;  %v1179_v26 = vpack.c.bf16 %v558_v25, %v557_v24 }
  0x4f   :  { %1102 = vmatpush3.bf16.msra.mxu0 %v1101_v29  ;;  %v1182_v29 = vpack.c.bf16 %v560_v28, %v559_v27 }
  0x50   :  { %1126 = vmatpush3.bf16.msra.mxu1 %v1125_v30  ;;  %1103 = vmatprep.subr.bf16.mxu0 %v1260_v0  ;;  %v561_v30 = vld [vmem:[#allocation2 + $0x320] sm:$0xff] }
  0x51   :  { %1127 = vmatprep.subr.bf16.mxu1 %v1260_v0  ;;  %v1185_v32 = vpack.c.bf16 %v562_v31, %v561_v30 }
  0x53   :  { %1105 = vmatpush3.bf16.msra.mxu0 %v1104_v35  ;;  %v1188_v35 = vpack.c.bf16 %v564_v34, %v563_v33 }
  0x54   :  { %1129 = vmatpush3.bf16.msra.mxu1 %v1128_v36  ;;  %1130 = vmatprep.subr.bf16.mxu0 %v1260_v0  ;;  %v565_v36 = vld [vmem:[#allocation2 + $0x340] sm:$0xff] }
  0x55   :  { %1154 = vmatprep.subr.bf16.mxu1 %v1260_v0  ;;  %v1191_v38 = vpack.c.bf16 %v566_v37, %v565_v36 }
  0x56   :  { %892 = vmatmul.mubr.f32.vlgmr.msra.gmra.mrb[2].mxu0 %v1319_v54 }
  0x57   :  { %1132 = vmatpush3.bf16.msra.mxu0 %v1131_v41  ;;  %927 = vmatmul.mubr.f32.vlgmr.msra.gmra.mrb[2].mxu1 %v1319_v54  ;;  %v569_v41 = vld [vmem:[#allocation2 + $0x360] sm:$0xff] }
  0x58   :  { %1156 = vmatpush3.bf16.msra.mxu1 %v1155_v42  ;;  %1133 = vmatprep.subr.bf16.mxu0 %v1260_v0  ;;  %v570_v42 = vld [vmem:[#allocation2 + $0x368] sm:$0xff] }
  0x59   :  { %1157 = vmatprep.subr.bf16.mxu1 %v1260_v0  ;;  %961 = vmatprep.mubr.msk.f32.mxu0 %vm1261_vm0, %v1262_v1  ;;  %v1197_v43 = vpack.c.bf16 %v570_v42, %v569_v41 }
  0x5a   :  { %996 = vmatprep.mubr.msk.f32.mxu1 %vm1261_vm0, %v1262_v1 }
  0x5b   :  { %1135 = vmatpush3.bf16.msra.mxu0 %v1134_v47 }
  0x5c   :  { %1159 = vmatpush3.bf16.msra.mxu1 %v1158_v48  ;;  %1136 = vmatprep.subr.bf16.mxu0 %v1260_v0 }
  0x5d   :  { %1160 = vmatprep.subr.bf16.mxu1 %v1260_v0 }
  0x5f   :  { %1138 = vmatpush3.bf16.msra.mxu0 %v1137_v53 }
  0x60   :  { %1162 = vmatpush3.bf16.msra.mxu1 %v1161_v55  ;;  %1139 = vmatprep.subr.bf16.mxu0 %v1260_v0 }
  0x61   :  { %1163 = vmatprep.subr.bf16.mxu1 %v1260_v0 }
  0x63   :  { %1141 = vmatpush3.bf16.msra.mxu0 %v1140_v60 }
  0x64   :  { %1165 = vmatpush3.bf16.msra.mxu1 %v1164_v61  ;;  %1142 = vmatprep.subr.bf16.mxu0 %v1260_v0 }
  0x65   :  { %1166 = vmatprep.subr.bf16.mxu1 %v1260_v0 }
  0x67   :  { %1144 = vmatpush3.bf16.msra.mxu0 %v1143_v4 }
  0x68   :  { %1168 = vmatpush3.bf16.msra.mxu1 %v1167_v5  ;;  %1145 = vmatprep.subr.bf16.mxu0 %v1260_v0 }
  0x69   :  { %1169 = vmatprep.subr.bf16.mxu1 %v1260_v0 }
  0x6b   :  { %1147 = vmatpush3.bf16.msra.mxu0 %v1146_v10 }
  0x6c   :  { %1171 = vmatpush3.bf16.msra.mxu1 %v1170_v11  ;;  %1148 = vmatprep.subr.bf16.mxu0 %v1260_v0 }
  0x6d   :  { %1172 = vmatprep.subr.bf16.mxu1 %v1260_v0 }
  0x6f   :  { %1150 = vmatpush3.bf16.msra.mxu0 %v1149_v16 }
  0x70   :  { %1174 = vmatpush3.bf16.msra.mxu1 %v1173_v17  ;;  %1151 = vmatprep.subr.bf16.mxu0 %v1260_v0 }
  0x71   :  { %1175 = vmatprep.subr.bf16.mxu1 %v1260_v0 }
  0x73   :  { %1153 = vmatpush3.bf16.msra.mxu0 %v1152_v22 }
  0x74   :  { %1177 = vmatpush3.bf16.msra.mxu1 %v1176_v23  ;;  %1178 = vmatprep.subr.bf16.mxu0 %v1260_v0 }
  0x76   :  { %962 = vmatmul.mubr.f32.vlgmr.msra.gmra.mrb[4].mxu0 %v1319_v54 }
  0x77   :  { %1180 = vmatpush3.bf16.msra.mxu0 %v1179_v26  ;;  %997 = vmatmul.mubr.f32.vlgmr.msra.gmra.mrb[4].mxu1 %v1319_v54 }
  0x78   :  { %1181 = vmatprep.subr.bf16.mxu0 %v1260_v0  ;;  %1031 = vmatprep.mubr.msk.f32.mxu0 %vm1261_vm0, %v1262_v1  ;;  %v1194_v1 = vpack.c.bf16 %v568_v40, %v567_v39 }
  0x7b   :  { %1183 = vmatpush3.bf16.msra.mxu0 %v1182_v29 }
  0x7c   :  { %1184 = vmatprep.subr.bf16.mxu0 %v1260_v0 }
  0x7f   :  { %1186 = vmatpush3.bf16.msra.mxu0 %v1185_v32 }
  0x80   :  { %1187 = vmatprep.subr.bf16.mxu0 %v1260_v0 }
  0x83   :  { %1189 = vmatpush3.bf16.msra.mxu0 %v1188_v35 }
  0x84   :  { %1190 = vmatprep.subr.bf16.mxu0 %v1260_v0 }
  0x87   :  { %1192 = vmatpush3.bf16.msra.mxu0 %v1191_v38 }
  0x88   :  { %1193 = vmatprep.subr.bf16.mxu0 %v1260_v0 }
  0x8b   :  { %1195 = vmatpush3.bf16.msra.mxu0 %v1194_v1 }
  0x8c   :  { %1196 = vmatprep.subr.bf16.mxu0 %v1260_v0 }
  0x8f   :  { %1198 = vmatpush3.bf16.msra.mxu0 %v1197_v43 }
  0x90   :  { %1199 = vmatprep.subr.bf16.mxu0 %v1260_v0 }
  0x93   :  { %1201 = vmatpush3.bf16.msra.mxu0 %v1200_v46 }
  0x96   :  { %1032 = vmatmul.mubr.f32.vlgmr.msra.gmra.mrb[6].mxu0 %v1319_v54  ;;  %v669_v54 = vld [vmem:[%s1395_s2] ss:$0 sm:$0xff] }
 0x109   :  { %v112_v47 = vpop.f32.mrb[0].mxu0 }
 0x10a   :  { %v823_v48 = vpop.f32.mrb[1].mxu0  ;;  %v199_v49 = vpop.f32.mrb[0].mxu1 }
 0x10b   :  { %v203_v50 = vmax.f32 %v112_v47, %v199_v49  ;;  %v858_v51 = vpop.f32.mrb[1].mxu1 }
 0x129   :  { %v287_v52 = vpop.f32.mrb[2].mxu0 }
 0x12a   :  { %v291_v53 = vmax.f32 %v203_v50, %v287_v52  ;;  %v893_v55 = vpop.f32.mrb[3].mxu0  ;;  %v375_v56 = vpop.f32.mrb[2].mxu1 }
 0x12b   :  { %v928_v57 = vpop.f32.mrb[3].mxu1 }
 0x12c   :  { %v379_v58 = vmax.f32 %v291_v53, %v375_v56 }
 0x149   :  { %v463_v59 = vpop.f32.mrb[4].mxu0 }
 0x14a   :  { %v467_v60 = vmax.f32 %v379_v58, %v463_v59  ;;  %v963_v61 = vpop.f32.mrb[5].mxu0  ;;  %v551_v62 = vpop.f32.mrb[4].mxu1 }
 0x14b   :  { %v998_v63 = vpop.f32.mrb[5].mxu1 }
 0x14c   :  { %v555_v0 = vmax.f32 %v467_v60, %v551_v62 }
 0x169   :  { %v639_v2 = vpop.f32.mrb[6].mxu0 }
 0x16a   :  { %v643_v3 = vmax.f32 %v555_v0, %v639_v2  ;;  %v1033_v4 = vpop.f32.mrb[7].mxu0 }
 0x16c   :  { %v651_v5 = vadd.f32 %v669_v54, %v643_v3 }
 0x16e   :  { %v652_v6 = vmax.f32 %v651_v5, 0.0 }
 0x170   :  { %653 = vst [vmem:[#allocation5] sm:$0xff] %v652_v6 }
 0x171   :  { %1242 = shalt.err (!%p1239_p12)
}
 0x172   :  { %s1243_s6 = scalar_lea.hbm %s1396_s3, 128 }
 0x173   :  { %p1244_p13 = scmp.ne.s32.totalorder %s1396_s3, %s1243_s6  ;;  %p1247_p0 = scmp.lt.u32.totalorder %s1243_s6, %s1396_s3 }
 0x175   :  { %p1249_p1 = pnand %p1247_p0, %p1244_p13 }
 0x177   :  { %1252 = shalt.err (!%p1249_p1)
}
 0x178   :  { %663 = dma.vmem_to_hbm [thread:$0]  %s661_s29, 128, %s1396_s3, [#allocation4]  }
 0x179   :  { %1255 = dma.done.wait [#allocation4], 128  }
 0x17a   :  { %1256 = vsyncadd [#allocation4], 4294967168 }
 0x17b   :  { %667 = vsyncpa [#allocation3], 1 }
 0x17c   :  { %668 = vsyncpa [#allocation4], 1 }

</bundles_post_ra>
